<compile_context>
chip_gen: v7x
topology: tpu7x:2x2x1
jax: 0.10.0
libtpu: 0.0.40
codegen_flags: <defaults>
</compile_context>

<pallas_src>
import functools

import jax
import jax.numpy as jnp
from jax import lax
from jax.experimental import pallas as pl
from jax.experimental.pallas import tpu as pltpu


# ----------------------------- Pallas kernel ---------------------------------
def bigru_kernel(text_ref,                      # (T*B, 1) int32 token ids (time-major flatten)
                 emb_ref,                       # (V, E)   embedding table
                 wA_ref, wB_ref,                # (E, 6H)  fwd / bwd input-proj weights (interleaved cols)
                 bA_ref, bB_ref,                # (1, 6H)  fwd / bwd input biases (+ folded bhh_r, bhh_z)
                 whh_ref,                       # (2H, 6H) block-diagonal recurrent weights
                 bhhn_ref,                      # (1, 2H)  recurrent n-gate bias [fwd | bwd]
                 w1_ref, b1_ref,                # fc1: (2H, E), (1, E)
                 bns_ref, bnb_ref,              # folded BatchNorm1d scale/shift: (1, E)
                 w2_ref, b2_ref,                # fc2: (E, L), (1, L)
                 out_ref,                       # (B, L)
                 *, T, B):
    V, E = emb_ref.shape
    H2 = whh_ref.shape[0]                       # 2H
    TB = T * B

    # --- fused embedding lookup: one-hot matmul on the MXU (off the serial chain) ---
    ids = text_ref[...]                                                   # (TB, 1) i32
    iota = lax.broadcasted_iota(jnp.int32, (TB, V), 1)
    onehot = (iota == ids).astype(jnp.float32)                            # (TB, V)
    x = jnp.dot(onehot, emb_ref[...], preferred_element_type=jnp.float32)  # (TB, E)

    # --- hoisted input projections: all timesteps, both directions, one pass each ---
    # column layout of 6H: [r_f | r_b | z_f | z_b | n_f | n_b]
    proj_f = jnp.dot(x, wA_ref[...], preferred_element_type=jnp.float32) + bA_ref[...]  # fwd cols filled
    proj_b = jnp.dot(x, wB_ref[...], preferred_element_type=jnp.float32) + bB_ref[...]  # bwd cols filled

    whh = whh_ref[...]                                                    # (2H, 6H)
    bhh_n = jnp.broadcast_to(bhhn_ref[...], (B, H2))                      # hoisted broadcast

    # --- fully unrolled bidirectional recurrence: ONE MXU dot per step on the serial chain ---
    h = jnp.zeros((B, H2), jnp.float32)                                   # [h_fwd | h_bwd]
    for t in range(T):
        # fwd direction consumes x[t], bwd direction consumes x[T-1-t]; the zero-padded column
        # interleave makes this a plain VPU add (no lane shuffling).
        gi = proj_f[t * B:(t + 1) * B, :] + proj_b[(T - 1 - t) * B:(T - t) * B, :]   # (B, 6H)
        gh = jnp.dot(h, whh, preferred_element_type=jnp.float32)                     # (B, 6H)
        r = jax.nn.sigmoid(gi[:, 0:H2] + gh[:, 0:H2])
        z = jax.nn.sigmoid(gi[:, H2:2 * H2] + gh[:, H2:2 * H2])
        n = jnp.tanh(gi[:, 2 * H2:3 * H2] + r * (gh[:, 2 * H2:3 * H2] + bhh_n))
        h = (1.0 - z) * n + z * h

    # h already equals concat([h_fwd_last, h_bwd_last], -1) == h_n.permute(1,0,2).reshape(B,-1)
    # --- FC head: Linear -> BatchNorm1d(eval, folded) -> ReLU -> (Dropout=id) -> Linear ---
    z1 = jnp.dot(h, w1_ref[...], preferred_element_type=jnp.float32) + b1_ref[...]
    z1 = z1 * bns_ref[...] + bnb_ref[...]
    z1 = jnp.maximum(z1, 0.0)
    out_ref[...] = jnp.dot(z1, w2_ref[...], preferred_element_type=jnp.float32) + b2_ref[...]


# ------------------------------ wrapper ---------------------------------------
def bigru_forward(text, kparams):
    """text: (T, B) int32 token ids. Returns logits (B, L)."""
    T, B = text.shape
    L = kparams["b2"].shape[1]
    ids = text.reshape(T * B, 1).astype(jnp.int32)

    args = (
        ids, kparams["embedding"],
        kparams["wA"], kparams["wB"], kparams["bA"], kparams["bB"],
        kparams["whh_blk"], kparams["bhh_n"],
        kparams["w1"], kparams["b1"], kparams["bn_scale"], kparams["bn_shift"],
        kparams["w2"], kparams["b2"],
    )
    vmem = pl.BlockSpec(memory_space=pltpu.MemorySpace.VMEM)
    kernel = functools.partial(bigru_kernel, T=T, B=B)
    return pl.pallas_call(
        kernel,
        out_shape=jax.ShapeDtypeStruct((B, L), jnp.float32),
        in_specs=[vmem] * len(args),
        out_specs=vmem,
    )(*args)


# --------------------------- params / layout prep -------------------------------
def init_params(key, vocab_size, E, L):
    H = E
    ks = jax.random.split(key, 16)
    s = 1.0 / jnp.sqrt(H)
    u = lambda k, shape: jax.random.uniform(k, shape, jnp.float32, -s, s)
    p = {
        "embedding": jax.random.normal(ks[0], (vocab_size, E), jnp.float32),
        # GRU weights stored pre-transposed: x @ W  (W: (in, 3H)), gate order r|z|n.
        "wih_f": u(ks[1], (E, 3 * H)), "whh_f": u(ks[2], (H, 3 * H)),
        "bih_f": u(ks[3], (1, 3 * H)), "bhh_f": u(ks[4], (1, 3 * H)),
        "wih_b": u(ks[5], (E, 3 * H)), "whh_b": u(ks[6], (H, 3 * H)),
        "bih_b": u(ks[7], (1, 3 * H)), "bhh_b": u(ks[8], (1, 3 * H)),
        "w1": u(ks[9], (2 * H, E)), "b1": u(ks[10], (1, E)),
        "w2": u(ks[11], (E, L)), "b2": u(ks[12], (1, L)),
    }
    # Fresh BatchNorm1d: gamma=1, beta=0, running_mean=0, running_var=1, eps=1e-5 (eval mode).
    eps = 1e-5
    gamma = jnp.ones((1, E), jnp.float32)
    beta = jnp.zeros((1, E), jnp.float32)
    rmean = jnp.zeros((1, E), jnp.float32)
    rvar = jnp.ones((1, E), jnp.float32)
    scale = gamma / jnp.sqrt(rvar + eps)
    p["bn_scale"] = scale
    p["bn_shift"] = beta - rmean * scale
    return p


def prepare_kernel_params(p):
    """One-time re-layout of GRU weights into the kernel's interleaved gate format.

    6H column layout: [r_f | r_b | z_f | z_b | n_f | n_b]   (H columns each).
    """
    E = p["embedding"].shape[1]
    H = E

    def split3(w):  # columns r | z | n
        return w[..., 0:H], w[..., H:2 * H], w[..., 2 * H:3 * H]

    zE = jnp.zeros((E, H), jnp.float32)
    zH = jnp.zeros((H, H), jnp.float32)
    z1 = jnp.zeros((1, H), jnp.float32)

    wfr, wfz, wfn = split3(p["wih_f"])
    wbr, wbz, wbn = split3(p["wih_b"])
    wA = jnp.concatenate([wfr, zE, wfz, zE, wfn, zE], axis=1)          # (E, 6H) fwd columns
    wB = jnp.concatenate([zE, wbr, zE, wbz, zE, wbn], axis=1)          # (E, 6H) bwd columns

    bifr, bifz, bifn = split3(p["bih_f"])
    bibr, bibz, bibn = split3(p["bih_b"])
    bhfr, bhfz, bhfn = split3(p["bhh_f"])
    bhbr, bhbz, bhbn = split3(p["bhh_b"])
    # r/z recurrent biases are pure adds -> fold them into the precomputed input projections.
    bA = jnp.concatenate([bifr + bhfr, z1, bifz + bhfz, z1, bifn, z1], axis=1)   # (1, 6H)
    bB = jnp.concatenate([z1, bibr + bhbr, z1, bibz + bhbz, z1, bibn], axis=1)   # (1, 6H)

    hfr, hfz, hfn = split3(p["whh_f"])
    hbr, hbz, hbn = split3(p["whh_b"])
    top = jnp.concatenate([hfr, zH, hfz, zH, hfn, zH], axis=1)          # rows from h_fwd
    bot = jnp.concatenate([zH, hbr, zH, hbz, zH, hbn], axis=1)          # rows from h_bwd
    whh_blk = jnp.concatenate([top, bot], axis=0)                       # (2H, 6H) block-diagonal

    bhh_n = jnp.concatenate([bhfn, bhbn], axis=1)                       # (1, 2H) n-gate recurrent bias

    return {
        "embedding": p["embedding"],
        "wA": wA, "wB": wB, "bA": bA, "bB": bB,
        "whh_blk": whh_blk, "bhh_n": bhh_n,
        "w1": p["w1"], "b1": p["b1"],
        "bn_scale": p["bn_scale"], "bn_shift": p["bn_shift"],
        "w2": p["w2"], "b2": p["b2"],
    }


# ------------------------------ reference ---------------------------------------
def bigru_ref(text, params):
    """Pure-JAX reference with PyTorch Bigru semantics, for correctness check."""
    T, B = text.shape
    E = params["embedding"].shape[1]
    H = E
    x = jnp.take(params["embedding"], text, axis=0).astype(jnp.float32)   # (T, B, E)

    def cell(h, x_t, wih, whh, bih, bhh):
        gi = x_t @ wih + bih
        gh = h @ whh + bhh
        r = jax.nn.sigmoid(gi[:, :H] + gh[:, :H])
        z = jax.nn.sigmoid(gi[:, H:2 * H] + gh[:, H:2 * H])
        n = jnp.tanh(gi[:, 2 * H:] + r * gh[:, 2 * H:])
        return (1.0 - z) * n + z * h

    def run_dir(xs, wih, whh, bih, bhh):
        def step(h, x_t):
            return cell(h, x_t, wih, whh, bih, bhh), None
        h, _ = lax.scan(step, jnp.zeros((B, H), jnp.float32), xs)
        return h

    h_f = run_dir(x, params["wih_f"], params["whh_f"], params["bih_f"], params["bhh_f"])
    h_b = run_dir(x[::-1], params["wih_b"], params["whh_b"], params["bih_b"], params["bhh_b"])
    hcat = jnp.concatenate([h_f, h_b], axis=-1)
    z1 = hcat @ params["w1"] + params["b1"]
    z1 = z1 * params["bn_scale"] + params["bn_shift"]
    z1 = jnp.maximum(z1, 0.0)
    return z1 @ params["w2"] + params["b2"]


# ------------------------------- main ------------------------------------------
if __name__ == "__main__":
    vocab_size, E, L = 50, 32, 4      # config.vocab_size, config.embedding_dim, config.label_num
    T, B = 8, 4                       # seq length, batch

    key = jax.random.PRNGKey(0)
    k_param, k_text = jax.random.split(key)
    params = init_params(k_param, vocab_size, E, L)
    kparams = prepare_kernel_params(params)       # one-time weight re-layout
    text = jax.random.randint(k_text, (T, B), 0, vocab_size, dtype=jnp.int32)

    logits = jax.block_until_ready(bigru_forward(text, kparams))
    ref = jax.block_until_ready(bigru_ref(text, params))

    assert logits.shape == (B, L)
    assert jnp.allclose(logits, ref, atol=1e-3, rtol=1e-3), (logits, ref)
    print("KERNEL_OK")
</pallas_src>

<mosaic_0001>
module attributes {stable_mosaic.version = 11 : i64} {
  func.func @bigru_kernel(%arg0: memref<32x1xi32, #tpu.memory_space<vmem>>, %arg1: memref<50x32xf32, #tpu.memory_space<vmem>>, %arg2: memref<32x192xf32, #tpu.memory_space<vmem>>, %arg3: memref<32x192xf32, #tpu.memory_space<vmem>>, %arg4: memref<1x192xf32, #tpu.memory_space<vmem>>, %arg5: memref<1x192xf32, #tpu.memory_space<vmem>>, %arg6: memref<64x192xf32, #tpu.memory_space<vmem>>, %arg7: memref<1x64xf32, #tpu.memory_space<vmem>>, %arg8: memref<64x32xf32, #tpu.memory_space<vmem>>, %arg9: memref<1x32xf32, #tpu.memory_space<vmem>>, %arg10: memref<1x32xf32, #tpu.memory_space<vmem>>, %arg11: memref<1x32xf32, #tpu.memory_space<vmem>>, %arg12: memref<32x4xf32, #tpu.memory_space<vmem>>, %arg13: memref<1x4xf32, #tpu.memory_space<vmem>>, %arg14: memref<4x4xf32, #tpu.memory_space<vmem>>) attributes {dimension_semantics = [], scalar_prefetch = 0 : i64, scratch_operands = 0 : i64, tpu.core_type = #tpu.core_type<tc>} {
    %c0 = arith.constant 0 : index
    %c0_0 = arith.constant 0 : index
    %0 = vector.load %arg0[%c0, %c0_0] : memref<32x1xi32, #tpu.memory_space<vmem>>, vector<32x1xi32>
    %1 = tpu.iota {dimensions = array<i32: 1>} : vector<32x50xi32>
    %2 = vector.broadcast %0 : vector<32x1xi32> to vector<32x50xi32>
    %3 = arith.cmpi eq, %1, %2 : vector<32x50xi32>
    %4 = arith.extui %3 : vector<32x50xi1> to vector<32x50xi32>
    %5 = arith.sitofp %4 : vector<32x50xi32> to vector<32x50xf32>
    %c0_1 = arith.constant 0 : index
    %c0_2 = arith.constant 0 : index
    %6 = vector.load %arg1[%c0_1, %c0_2] : memref<50x32xf32, #tpu.memory_space<vmem>>, vector<50x32xf32>
    %cst = arith.constant dense<0.000000e+00> : vector<32x32xf32>
    %7 = tpu.matmul %5, %6, %cst {dimension_numbers = #tpu.dot_dimension_numbers<[1], [0], [0], [1], [0, 0, 1, 1], [], []>} : vector<32x50xf32>, vector<50x32xf32>, vector<32x32xf32> -> vector<32x32xf32>
    %c0_3 = arith.constant 0 : index
    %c0_4 = arith.constant 0 : index
    %8 = vector.load %arg2[%c0_3, %c0_4] : memref<32x192xf32, #tpu.memory_space<vmem>>, vector<32x192xf32>
    %cst_5 = arith.constant dense<0.000000e+00> : vector<32x192xf32>
    %9 = tpu.matmul %7, %8, %cst_5 {dimension_numbers = #tpu.dot_dimension_numbers<[1], [0], [0], [1], [0, 0, 1, 1], [], []>} : vector<32x32xf32>, vector<32x192xf32>, vector<32x192xf32> -> vector<32x192xf32>
    %c0_6 = arith.constant 0 : index
    %c0_7 = arith.constant 0 : index
    %10 = vector.load %arg4[%c0_6, %c0_7] : memref<1x192xf32, #tpu.memory_space<vmem>>, vector<1x192xf32>
    %11 = vector.broadcast %10 : vector<1x192xf32> to vector<32x192xf32>
    %12 = arith.addf %9, %11 : vector<32x192xf32>
    %c0_8 = arith.constant 0 : index
    %c0_9 = arith.constant 0 : index
    %13 = vector.load %arg3[%c0_8, %c0_9] : memref<32x192xf32, #tpu.memory_space<vmem>>, vector<32x192xf32>
    %cst_10 = arith.constant dense<0.000000e+00> : vector<32x192xf32>
    %14 = tpu.matmul %7, %13, %cst_10 {dimension_numbers = #tpu.dot_dimension_numbers<[1], [0], [0], [1], [0, 0, 1, 1], [], []>} : vector<32x32xf32>, vector<32x192xf32>, vector<32x192xf32> -> vector<32x192xf32>
    %c0_11 = arith.constant 0 : index
    %c0_12 = arith.constant 0 : index
    %15 = vector.load %arg5[%c0_11, %c0_12] : memref<1x192xf32, #tpu.memory_space<vmem>>, vector<1x192xf32>
    %16 = vector.broadcast %15 : vector<1x192xf32> to vector<32x192xf32>
    %17 = arith.addf %14, %16 : vector<32x192xf32>
    %c0_13 = arith.constant 0 : index
    %c0_14 = arith.constant 0 : index
    %18 = vector.load %arg6[%c0_13, %c0_14] : memref<64x192xf32, #tpu.memory_space<vmem>>, vector<64x192xf32>
    %c0_15 = arith.constant 0 : index
    %c0_16 = arith.constant 0 : index
    %19 = vector.load %arg7[%c0_15, %c0_16] : memref<1x64xf32, #tpu.memory_space<vmem>>, vector<1x64xf32>
    %20 = vector.shape_cast %19 : vector<1x64xf32> to vector<1x64xf32>
    %21 = vector.broadcast %20 : vector<1x64xf32> to vector<4x64xf32>
    %cst_17 = arith.constant 0.000000e+00 : f32
    %22 = vector.broadcast %cst_17 : f32 to vector<4x64xf32>
    %23 = vector.extract_strided_slice %12 {offsets = [0, 0], sizes = [4, 192], strides = [1, 1]} : vector<32x192xf32> to vector<4x192xf32>
    %24 = vector.extract_strided_slice %17 {offsets = [28, 0], sizes = [4, 192], strides = [1, 1]} : vector<32x192xf32> to vector<4x192xf32>
    %25 = arith.addf %23, %24 : vector<4x192xf32>
    %cst_18 = arith.constant dense<0.000000e+00> : vector<4x192xf32>
    %26 = tpu.matmul %22, %18, %cst_18 {dimension_numbers = #tpu.dot_dimension_numbers<[1], [0], [0], [1], [0, 0, 1, 1], [], []>} : vector<4x64xf32>, vector<64x192xf32>, vector<4x192xf32> -> vector<4x192xf32>
    %27 = vector.extract_strided_slice %25 {offsets = [0, 0], sizes = [4, 64], strides = [1, 1]} : vector<4x192xf32> to vector<4x64xf32>
    %28 = vector.extract_strided_slice %26 {offsets = [0, 0], sizes = [4, 64], strides = [1, 1]} : vector<4x192xf32> to vector<4x64xf32>
    %29 = arith.addf %27, %28 : vector<4x64xf32>
    %30 = arith.negf %29 : vector<4x64xf32>
    %31 = math.exp %30 : vector<4x64xf32>
    %cst_19 = arith.constant 1.000000e+00 : f32
    %32 = vector.broadcast %cst_19 : f32 to vector<4x64xf32>
    %33 = arith.addf %32, %31 : vector<4x64xf32>
    %34 = arith.divf %32, %33 : vector<4x64xf32>
    %35 = vector.extract_strided_slice %25 {offsets = [0, 64], sizes = [4, 64], strides = [1, 1]} : vector<4x192xf32> to vector<4x64xf32>
    %36 = vector.extract_strided_slice %26 {offsets = [0, 64], sizes = [4, 64], strides = [1, 1]} : vector<4x192xf32> to vector<4x64xf32>
    %37 = arith.addf %35, %36 : vector<4x64xf32>
    %38 = arith.negf %37 : vector<4x64xf32>
    %39 = math.exp %38 : vector<4x64xf32>
    %cst_20 = arith.constant 1.000000e+00 : f32
    %40 = vector.broadcast %cst_20 : f32 to vector<4x64xf32>
    %41 = arith.addf %40, %39 : vector<4x64xf32>
    %42 = arith.divf %40, %41 : vector<4x64xf32>
    %43 = vector.extract_strided_slice %25 {offsets = [0, 128], sizes = [4, 64], strides = [1, 1]} : vector<4x192xf32> to vector<4x64xf32>
    %44 = vector.extract_strided_slice %26 {offsets = [0, 128], sizes = [4, 64], strides = [1, 1]} : vector<4x192xf32> to vector<4x64xf32>
    %45 = arith.addf %44, %21 : vector<4x64xf32>
    %46 = arith.mulf %34, %45 : vector<4x64xf32>
    %47 = arith.addf %43, %46 : vector<4x64xf32>
    %48 = math.tanh %47 : vector<4x64xf32>
    %cst_21 = arith.constant 1.000000e+00 : f32
    %49 = vector.broadcast %cst_21 : f32 to vector<4x64xf32>
    %50 = arith.subf %49, %42 : vector<4x64xf32>
    %51 = arith.mulf %50, %48 : vector<4x64xf32>
    %52 = arith.mulf %42, %22 : vector<4x64xf32>
    %53 = arith.addf %51, %52 : vector<4x64xf32>
    %54 = vector.extract_strided_slice %12 {offsets = [4, 0], sizes = [4, 192], strides = [1, 1]} : vector<32x192xf32> to vector<4x192xf32>
    %55 = vector.extract_strided_slice %17 {offsets = [24, 0], sizes = [4, 192], strides = [1, 1]} : vector<32x192xf32> to vector<4x192xf32>
    %56 = arith.addf %54, %55 : vector<4x192xf32>
    %cst_22 = arith.constant dense<0.000000e+00> : vector<4x192xf32>
    %57 = tpu.matmul %53, %18, %cst_22 {dimension_numbers = #tpu.dot_dimension_numbers<[1], [0], [0], [1], [0, 0, 1, 1], [], []>} : vector<4x64xf32>, vector<64x192xf32>, vector<4x192xf32> -> vector<4x192xf32>
    %58 = vector.extract_strided_slice %56 {offsets = [0, 0], sizes = [4, 64], strides = [1, 1]} : vector<4x192xf32> to vector<4x64xf32>
    %59 = vector.extract_strided_slice %57 {offsets = [0, 0], sizes = [4, 64], strides = [1, 1]} : vector<4x192xf32> to vector<4x64xf32>
    %60 = arith.addf %58, %59 : vector<4x64xf32>
    %61 = arith.negf %60 : vector<4x64xf32>
    %62 = math.exp %61 : vector<4x64xf32>
    %cst_23 = arith.constant 1.000000e+00 : f32
    %63 = vector.broadcast %cst_23 : f32 to vector<4x64xf32>
    %64 = arith.addf %63, %62 : vector<4x64xf32>
    %65 = arith.divf %63, %64 : vector<4x64xf32>
    %66 = vector.extract_strided_slice %56 {offsets = [0, 64], sizes = [4, 64], strides = [1, 1]} : vector<4x192xf32> to vector<4x64xf32>
    %67 = vector.extract_strided_slice %57 {offsets = [0, 64], sizes = [4, 64], strides = [1, 1]} : vector<4x192xf32> to vector<4x64xf32>
    %68 = arith.addf %66, %67 : vector<4x64xf32>
    %69 = arith.negf %68 : vector<4x64xf32>
    %70 = math.exp %69 : vector<4x64xf32>
    %cst_24 = arith.constant 1.000000e+00 : f32
    %71 = vector.broadcast %cst_24 : f32 to vector<4x64xf32>
    %72 = arith.addf %71, %70 : vector<4x64xf32>
    %73 = arith.divf %71, %72 : vector<4x64xf32>
    %74 = vector.extract_strided_slice %56 {offsets = [0, 128], sizes = [4, 64], strides = [1, 1]} : vector<4x192xf32> to vector<4x64xf32>
    %75 = vector.extract_strided_slice %57 {offsets = [0, 128], sizes = [4, 64], strides = [1, 1]} : vector<4x192xf32> to vector<4x64xf32>
    %76 = arith.addf %75, %21 : vector<4x64xf32>
    %77 = arith.mulf %65, %76 : vector<4x64xf32>
    %78 = arith.addf %74, %77 : vector<4x64xf32>
    %79 = math.tanh %78 : vector<4x64xf32>
    %cst_25 = arith.constant 1.000000e+00 : f32
    %80 = vector.broadcast %cst_25 : f32 to vector<4x64xf32>
    %81 = arith.subf %80, %73 : vector<4x64xf32>
    %82 = arith.mulf %81, %79 : vector<4x64xf32>
    %83 = arith.mulf %73, %53 : vector<4x64xf32>
    %84 = arith.addf %82, %83 : vector<4x64xf32>
    %85 = vector.extract_strided_slice %12 {offsets = [8, 0], sizes = [4, 192], strides = [1, 1]} : vector<32x192xf32> to vector<4x192xf32>
    %86 = vector.extract_strided_slice %17 {offsets = [20, 0], sizes = [4, 192], strides = [1, 1]} : vector<32x192xf32> to vector<4x192xf32>
    %87 = arith.addf %85, %86 : vector<4x192xf32>
    %cst_26 = arith.constant dense<0.000000e+00> : vector<4x192xf32>
    %88 = tpu.matmul %84, %18, %cst_26 {dimension_numbers = #tpu.dot_dimension_numbers<[1], [0], [0], [1], [0, 0, 1, 1], [], []>} : vector<4x64xf32>, vector<64x192xf32>, vector<4x192xf32> -> vector<4x192xf32>
    %89 = vector.extract_strided_slice %87 {offsets = [0, 0], sizes = [4, 64], strides = [1, 1]} : vector<4x192xf32> to vector<4x64xf32>
    %90 = vector.extract_strided_slice %88 {offsets = [0, 0], sizes = [4, 64], strides = [1, 1]} : vector<4x192xf32> to vector<4x64xf32>
    %91 = arith.addf %89, %90 : vector<4x64xf32>
    %92 = arith.negf %91 : vector<4x64xf32>
    %93 = math.exp %92 : vector<4x64xf32>
    %cst_27 = arith.constant 1.000000e+00 : f32
    %94 = vector.broadcast %cst_27 : f32 to vector<4x64xf32>
    %95 = arith.addf %94, %93 : vector<4x64xf32>
    %96 = arith.divf %94, %95 : vector<4x64xf32>
    %97 = vector.extract_strided_slice %87 {offsets = [0, 64], sizes = [4, 64], strides = [1, 1]} : vector<4x192xf32> to vector<4x64xf32>
    %98 = vector.extract_strided_slice %88 {offsets = [0, 64], sizes = [4, 64], strides = [1, 1]} : vector<4x192xf32> to vector<4x64xf32>
    %99 = arith.addf %97, %98 : vector<4x64xf32>
    %100 = arith.negf %99 : vector<4x64xf32>
    %101 = math.exp %100 : vector<4x64xf32>
    %cst_28 = arith.constant 1.000000e+00 : f32
    %102 = vector.broadcast %cst_28 : f32 to vector<4x64xf32>
    %103 = arith.addf %102, %101 : vector<4x64xf32>
    %104 = arith.divf %102, %103 : vector<4x64xf32>
    %105 = vector.extract_strided_slice %87 {offsets = [0, 128], sizes = [4, 64], strides = [1, 1]} : vector<4x192xf32> to vector<4x64xf32>
    %106 = vector.extract_strided_slice %88 {offsets = [0, 128], sizes = [4, 64], strides = [1, 1]} : vector<4x192xf32> to vector<4x64xf32>
    %107 = arith.addf %106, %21 : vector<4x64xf32>
    %108 = arith.mulf %96, %107 : vector<4x64xf32>
    %109 = arith.addf %105, %108 : vector<4x64xf32>
    %110 = math.tanh %109 : vector<4x64xf32>
    %cst_29 = arith.constant 1.000000e+00 : f32
    %111 = vector.broadcast %cst_29 : f32 to vector<4x64xf32>
    %112 = arith.subf %111, %104 : vector<4x64xf32>
    %113 = arith.mulf %112, %110 : vector<4x64xf32>
    %114 = arith.mulf %104, %84 : vector<4x64xf32>
    %115 = arith.addf %113, %114 : vector<4x64xf32>
    %116 = vector.extract_strided_slice %12 {offsets = [12, 0], sizes = [4, 192], strides = [1, 1]} : vector<32x192xf32> to vector<4x192xf32>
    %117 = vector.extract_strided_slice %17 {offsets = [16, 0], sizes = [4, 192], strides = [1, 1]} : vector<32x192xf32> to vector<4x192xf32>
    %118 = arith.addf %116, %117 : vector<4x192xf32>
    %cst_30 = arith.constant dense<0.000000e+00> : vector<4x192xf32>
    %119 = tpu.matmul %115, %18, %cst_30 {dimension_numbers = #tpu.dot_dimension_numbers<[1], [0], [0], [1], [0, 0, 1, 1], [], []>} : vector<4x64xf32>, vector<64x192xf32>, vector<4x192xf32> -> vector<4x192xf32>
    %120 = vector.extract_strided_slice %118 {offsets = [0, 0], sizes = [4, 64], strides = [1, 1]} : vector<4x192xf32> to vector<4x64xf32>
    %121 = vector.extract_strided_slice %119 {offsets = [0, 0], sizes = [4, 64], strides = [1, 1]} : vector<4x192xf32> to vector<4x64xf32>
    %122 = arith.addf %120, %121 : vector<4x64xf32>
    %123 = arith.negf %122 : vector<4x64xf32>
    %124 = math.exp %123 : vector<4x64xf32>
    %cst_31 = arith.constant 1.000000e+00 : f32
    %125 = vector.broadcast %cst_31 : f32 to vector<4x64xf32>
    %126 = arith.addf %125, %124 : vector<4x64xf32>
    %127 = arith.divf %125, %126 : vector<4x64xf32>
    %128 = vector.extract_strided_slice %118 {offsets = [0, 64], sizes = [4, 64], strides = [1, 1]} : vector<4x192xf32> to vector<4x64xf32>
    %129 = vector.extract_strided_slice %119 {offsets = [0, 64], sizes = [4, 64], strides = [1, 1]} : vector<4x192xf32> to vector<4x64xf32>
    %130 = arith.addf %128, %129 : vector<4x64xf32>
    %131 = arith.negf %130 : vector<4x64xf32>
    %132 = math.exp %131 : vector<4x64xf32>
    %cst_32 = arith.constant 1.000000e+00 : f32
    %133 = vector.broadcast %cst_32 : f32 to vector<4x64xf32>
    %134 = arith.addf %133, %132 : vector<4x64xf32>
    %135 = arith.divf %133, %134 : vector<4x64xf32>
    %136 = vector.extract_strided_slice %118 {offsets = [0, 128], sizes = [4, 64], strides = [1, 1]} : vector<4x192xf32> to vector<4x64xf32>
    %137 = vector.extract_strided_slice %119 {offsets = [0, 128], sizes = [4, 64], strides = [1, 1]} : vector<4x192xf32> to vector<4x64xf32>
    %138 = arith.addf %137, %21 : vector<4x64xf32>
    %139 = arith.mulf %127, %138 : vector<4x64xf32>
    %140 = arith.addf %136, %139 : vector<4x64xf32>
    %141 = math.tanh %140 : vector<4x64xf32>
    %cst_33 = arith.constant 1.000000e+00 : f32
    %142 = vector.broadcast %cst_33 : f32 to vector<4x64xf32>
    %143 = arith.subf %142, %135 : vector<4x64xf32>
    %144 = arith.mulf %143, %141 : vector<4x64xf32>
    %145 = arith.mulf %135, %115 : vector<4x64xf32>
    %146 = arith.addf %144, %145 : vector<4x64xf32>
    %147 = vector.extract_strided_slice %12 {offsets = [16, 0], sizes = [4, 192], strides = [1, 1]} : vector<32x192xf32> to vector<4x192xf32>
    %148 = vector.extract_strided_slice %17 {offsets = [12, 0], sizes = [4, 192], strides = [1, 1]} : vector<32x192xf32> to vector<4x192xf32>
    %149 = arith.addf %147, %148 : vector<4x192xf32>
    %cst_34 = arith.constant dense<0.000000e+00> : vector<4x192xf32>
    %150 = tpu.matmul %146, %18, %cst_34 {dimension_numbers = #tpu.dot_dimension_numbers<[1], [0], [0], [1], [0, 0, 1, 1], [], []>} : vector<4x64xf32>, vector<64x192xf32>, vector<4x192xf32> -> vector<4x192xf32>
    %151 = vector.extract_strided_slice %149 {offsets = [0, 0], sizes = [4, 64], strides = [1, 1]} : vector<4x192xf32> to vector<4x64xf32>
    %152 = vector.extract_strided_slice %150 {offsets = [0, 0], sizes = [4, 64], strides = [1, 1]} : vector<4x192xf32> to vector<4x64xf32>
    %153 = arith.addf %151, %152 : vector<4x64xf32>
    %154 = arith.negf %153 : vector<4x64xf32>
    %155 = math.exp %154 : vector<4x64xf32>
    %cst_35 = arith.constant 1.000000e+00 : f32
    %156 = vector.broadcast %cst_35 : f32 to vector<4x64xf32>
    %157 = arith.addf %156, %155 : vector<4x64xf32>
    %158 = arith.divf %156, %157 : vector<4x64xf32>
    %159 = vector.extract_strided_slice %149 {offsets = [0, 64], sizes = [4, 64], strides = [1, 1]} : vector<4x192xf32> to vector<4x64xf32>
    %160 = vector.extract_strided_slice %150 {offsets = [0, 64], sizes = [4, 64], strides = [1, 1]} : vector<4x192xf32> to vector<4x64xf32>
    %161 = arith.addf %159, %160 : vector<4x64xf32>
    %162 = arith.negf %161 : vector<4x64xf32>
    %163 = math.exp %162 : vector<4x64xf32>
    %cst_36 = arith.constant 1.000000e+00 : f32
    %164 = vector.broadcast %cst_36 : f32 to vector<4x64xf32>
    %165 = arith.addf %164, %163 : vector<4x64xf32>
    %166 = arith.divf %164, %165 : vector<4x64xf32>
    %167 = vector.extract_strided_slice %149 {offsets = [0, 128], sizes = [4, 64], strides = [1, 1]} : vector<4x192xf32> to vector<4x64xf32>
    %168 = vector.extract_strided_slice %150 {offsets = [0, 128], sizes = [4, 64], strides = [1, 1]} : vector<4x192xf32> to vector<4x64xf32>
    %169 = arith.addf %168, %21 : vector<4x64xf32>
    %170 = arith.mulf %158, %169 : vector<4x64xf32>
    %171 = arith.addf %167, %170 : vector<4x64xf32>
    %172 = math.tanh %171 : vector<4x64xf32>
    %cst_37 = arith.constant 1.000000e+00 : f32
    %173 = vector.broadcast %cst_37 : f32 to vector<4x64xf32>
    %174 = arith.subf %173, %166 : vector<4x64xf32>
    %175 = arith.mulf %174, %172 : vector<4x64xf32>
    %176 = arith.mulf %166, %146 : vector<4x64xf32>
    %177 = arith.addf %175, %176 : vector<4x64xf32>
    %178 = vector.extract_strided_slice %12 {offsets = [20, 0], sizes = [4, 192], strides = [1, 1]} : vector<32x192xf32> to vector<4x192xf32>
    %179 = vector.extract_strided_slice %17 {offsets = [8, 0], sizes = [4, 192], strides = [1, 1]} : vector<32x192xf32> to vector<4x192xf32>
    %180 = arith.addf %178, %179 : vector<4x192xf32>
    %cst_38 = arith.constant dense<0.000000e+00> : vector<4x192xf32>
    %181 = tpu.matmul %177, %18, %cst_38 {dimension_numbers = #tpu.dot_dimension_numbers<[1], [0], [0], [1], [0, 0, 1, 1], [], []>} : vector<4x64xf32>, vector<64x192xf32>, vector<4x192xf32> -> vector<4x192xf32>
    %182 = vector.extract_strided_slice %180 {offsets = [0, 0], sizes = [4, 64], strides = [1, 1]} : vector<4x192xf32> to vector<4x64xf32>
    %183 = vector.extract_strided_slice %181 {offsets = [0, 0], sizes = [4, 64], strides = [1, 1]} : vector<4x192xf32> to vector<4x64xf32>
    %184 = arith.addf %182, %183 : vector<4x64xf32>
    %185 = arith.negf %184 : vector<4x64xf32>
    %186 = math.exp %185 : vector<4x64xf32>
    %cst_39 = arith.constant 1.000000e+00 : f32
    %187 = vector.broadcast %cst_39 : f32 to vector<4x64xf32>
    %188 = arith.addf %187, %186 : vector<4x64xf32>
    %189 = arith.divf %187, %188 : vector<4x64xf32>
    %190 = vector.extract_strided_slice %180 {offsets = [0, 64], sizes = [4, 64], strides = [1, 1]} : vector<4x192xf32> to vector<4x64xf32>
    %191 = vector.extract_strided_slice %181 {offsets = [0, 64], sizes = [4, 64], strides = [1, 1]} : vector<4x192xf32> to vector<4x64xf32>
    %192 = arith.addf %190, %191 : vector<4x64xf32>
    %193 = arith.negf %192 : vector<4x64xf32>
    %194 = math.exp %193 : vector<4x64xf32>
    %cst_40 = arith.constant 1.000000e+00 : f32
    %195 = vector.broadcast %cst_40 : f32 to vector<4x64xf32>
    %196 = arith.addf %195, %194 : vector<4x64xf32>
    %197 = arith.divf %195, %196 : vector<4x64xf32>
    %198 = vector.extract_strided_slice %180 {offsets = [0, 128], sizes = [4, 64], strides = [1, 1]} : vector<4x192xf32> to vector<4x64xf32>
    %199 = vector.extract_strided_slice %181 {offsets = [0, 128], sizes = [4, 64], strides = [1, 1]} : vector<4x192xf32> to vector<4x64xf32>
    %200 = arith.addf %199, %21 : vector<4x64xf32>
    %201 = arith.mulf %189, %200 : vector<4x64xf32>
    %202 = arith.addf %198, %201 : vector<4x64xf32>
    %203 = math.tanh %202 : vector<4x64xf32>
    %cst_41 = arith.constant 1.000000e+00 : f32
    %204 = vector.broadcast %cst_41 : f32 to vector<4x64xf32>
    %205 = arith.subf %204, %197 : vector<4x64xf32>
    %206 = arith.mulf %205, %203 : vector<4x64xf32>
    %207 = arith.mulf %197, %177 : vector<4x64xf32>
    %208 = arith.addf %206, %207 : vector<4x64xf32>
    %209 = vector.extract_strided_slice %12 {offsets = [24, 0], sizes = [4, 192], strides = [1, 1]} : vector<32x192xf32> to vector<4x192xf32>
    %210 = vector.extract_strided_slice %17 {offsets = [4, 0], sizes = [4, 192], strides = [1, 1]} : vector<32x192xf32> to vector<4x192xf32>
    %211 = arith.addf %209, %210 : vector<4x192xf32>
    %cst_42 = arith.constant dense<0.000000e+00> : vector<4x192xf32>
    %212 = tpu.matmul %208, %18, %cst_42 {dimension_numbers = #tpu.dot_dimension_numbers<[1], [0], [0], [1], [0, 0, 1, 1], [], []>} : vector<4x64xf32>, vector<64x192xf32>, vector<4x192xf32> -> vector<4x192xf32>
    %213 = vector.extract_strided_slice %211 {offsets = [0, 0], sizes = [4, 64], strides = [1, 1]} : vector<4x192xf32> to vector<4x64xf32>
    %214 = vector.extract_strided_slice %212 {offsets = [0, 0], sizes = [4, 64], strides = [1, 1]} : vector<4x192xf32> to vector<4x64xf32>
    %215 = arith.addf %213, %214 : vector<4x64xf32>
    %216 = arith.negf %215 : vector<4x64xf32>
    %217 = math.exp %216 : vector<4x64xf32>
    %cst_43 = arith.constant 1.000000e+00 : f32
    %218 = vector.broadcast %cst_43 : f32 to vector<4x64xf32>
    %219 = arith.addf %218, %217 : vector<4x64xf32>
    %220 = arith.divf %218, %219 : vector<4x64xf32>
    %221 = vector.extract_strided_slice %211 {offsets = [0, 64], sizes = [4, 64], strides = [1, 1]} : vector<4x192xf32> to vector<4x64xf32>
    %222 = vector.extract_strided_slice %212 {offsets = [0, 64], sizes = [4, 64], strides = [1, 1]} : vector<4x192xf32> to vector<4x64xf32>
    %223 = arith.addf %221, %222 : vector<4x64xf32>
    %224 = arith.negf %223 : vector<4x64xf32>
    %225 = math.exp %224 : vector<4x64xf32>
    %cst_44 = arith.constant 1.000000e+00 : f32
    %226 = vector.broadcast %cst_44 : f32 to vector<4x64xf32>
    %227 = arith.addf %226, %225 : vector<4x64xf32>
    %228 = arith.divf %226, %227 : vector<4x64xf32>
    %229 = vector.extract_strided_slice %211 {offsets = [0, 128], sizes = [4, 64], strides = [1, 1]} : vector<4x192xf32> to vector<4x64xf32>
    %230 = vector.extract_strided_slice %212 {offsets = [0, 128], sizes = [4, 64], strides = [1, 1]} : vector<4x192xf32> to vector<4x64xf32>
    %231 = arith.addf %230, %21 : vector<4x64xf32>
    %232 = arith.mulf %220, %231 : vector<4x64xf32>
    %233 = arith.addf %229, %232 : vector<4x64xf32>
    %234 = math.tanh %233 : vector<4x64xf32>
    %cst_45 = arith.constant 1.000000e+00 : f32
    %235 = vector.broadcast %cst_45 : f32 to vector<4x64xf32>
    %236 = arith.subf %235, %228 : vector<4x64xf32>
    %237 = arith.mulf %236, %234 : vector<4x64xf32>
    %238 = arith.mulf %228, %208 : vector<4x64xf32>
    %239 = arith.addf %237, %238 : vector<4x64xf32>
    %240 = vector.extract_strided_slice %12 {offsets = [28, 0], sizes = [4, 192], strides = [1, 1]} : vector<32x192xf32> to vector<4x192xf32>
    %241 = vector.extract_strided_slice %17 {offsets = [0, 0], sizes = [4, 192], strides = [1, 1]} : vector<32x192xf32> to vector<4x192xf32>
    %242 = arith.addf %240, %241 : vector<4x192xf32>
    %cst_46 = arith.constant dense<0.000000e+00> : vector<4x192xf32>
    %243 = tpu.matmul %239, %18, %cst_46 {dimension_numbers = #tpu.dot_dimension_numbers<[1], [0], [0], [1], [0, 0, 1, 1], [], []>} : vector<4x64xf32>, vector<64x192xf32>, vector<4x192xf32> -> vector<4x192xf32>
    %244 = vector.extract_strided_slice %242 {offsets = [0, 0], sizes = [4, 64], strides = [1, 1]} : vector<4x192xf32> to vector<4x64xf32>
    %245 = vector.extract_strided_slice %243 {offsets = [0, 0], sizes = [4, 64], strides = [1, 1]} : vector<4x192xf32> to vector<4x64xf32>
    %246 = arith.addf %244, %245 : vector<4x64xf32>
    %247 = arith.negf %246 : vector<4x64xf32>
    %248 = math.exp %247 : vector<4x64xf32>
    %cst_47 = arith.constant 1.000000e+00 : f32
    %249 = vector.broadcast %cst_47 : f32 to vector<4x64xf32>
    %250 = arith.addf %249, %248 : vector<4x64xf32>
    %251 = arith.divf %249, %250 : vector<4x64xf32>
    %252 = vector.extract_strided_slice %242 {offsets = [0, 64], sizes = [4, 64], strides = [1, 1]} : vector<4x192xf32> to vector<4x64xf32>
    %253 = vector.extract_strided_slice %243 {offsets = [0, 64], sizes = [4, 64], strides = [1, 1]} : vector<4x192xf32> to vector<4x64xf32>
    %254 = arith.addf %252, %253 : vector<4x64xf32>
    %255 = arith.negf %254 : vector<4x64xf32>
    %256 = math.exp %255 : vector<4x64xf32>
    %cst_48 = arith.constant 1.000000e+00 : f32
    %257 = vector.broadcast %cst_48 : f32 to vector<4x64xf32>
    %258 = arith.addf %257, %256 : vector<4x64xf32>
    %259 = arith.divf %257, %258 : vector<4x64xf32>
    %260 = vector.extract_strided_slice %242 {offsets = [0, 128], sizes = [4, 64], strides = [1, 1]} : vector<4x192xf32> to vector<4x64xf32>
    %261 = vector.extract_strided_slice %243 {offsets = [0, 128], sizes = [4, 64], strides = [1, 1]} : vector<4x192xf32> to vector<4x64xf32>
    %262 = arith.addf %261, %21 : vector<4x64xf32>
    %263 = arith.mulf %251, %262 : vector<4x64xf32>
    %264 = arith.addf %260, %263 : vector<4x64xf32>
    %265 = math.tanh %264 : vector<4x64xf32>
    %cst_49 = arith.constant 1.000000e+00 : f32
    %266 = vector.broadcast %cst_49 : f32 to vector<4x64xf32>
    %267 = arith.subf %266, %259 : vector<4x64xf32>
    %268 = arith.mulf %267, %265 : vector<4x64xf32>
    %269 = arith.mulf %259, %239 : vector<4x64xf32>
    %270 = arith.addf %268, %269 : vector<4x64xf32>
    %c0_50 = arith.constant 0 : index
    %c0_51 = arith.constant 0 : index
    %271 = vector.load %arg8[%c0_50, %c0_51] : memref<64x32xf32, #tpu.memory_space<vmem>>, vector<64x32xf32>
    %cst_52 = arith.constant dense<0.000000e+00> : vector<4x32xf32>
    %272 = tpu.matmul %270, %271, %cst_52 {dimension_numbers = #tpu.dot_dimension_numbers<[1], [0], [0], [1], [0, 0, 1, 1], [], []>} : vector<4x64xf32>, vector<64x32xf32>, vector<4x32xf32> -> vector<4x32xf32>
    %c0_53 = arith.constant 0 : index
    %c0_54 = arith.constant 0 : index
    %273 = vector.load %arg9[%c0_53, %c0_54] : memref<1x32xf32, #tpu.memory_space<vmem>>, vector<1x32xf32>
    %274 = vector.broadcast %273 : vector<1x32xf32> to vector<4x32xf32>
    %275 = arith.addf %272, %274 : vector<4x32xf32>
    %c0_55 = arith.constant 0 : index
    %c0_56 = arith.constant 0 : index
    %276 = vector.load %arg10[%c0_55, %c0_56] : memref<1x32xf32, #tpu.memory_space<vmem>>, vector<1x32xf32>
    %277 = vector.broadcast %276 : vector<1x32xf32> to vector<4x32xf32>
    %278 = arith.mulf %275, %277 : vector<4x32xf32>
    %c0_57 = arith.constant 0 : index
    %c0_58 = arith.constant 0 : index
    %279 = vector.load %arg11[%c0_57, %c0_58] : memref<1x32xf32, #tpu.memory_space<vmem>>, vector<1x32xf32>
    %280 = vector.broadcast %279 : vector<1x32xf32> to vector<4x32xf32>
    %281 = arith.addf %278, %280 : vector<4x32xf32>
    %cst_59 = arith.constant 0.000000e+00 : f32
    %282 = vector.broadcast %cst_59 : f32 to vector<4x32xf32>
    %283 = arith.maximumf %281, %282 : vector<4x32xf32>
    %c0_60 = arith.constant 0 : index
    %c0_61 = arith.constant 0 : index
    %284 = vector.load %arg12[%c0_60, %c0_61] : memref<32x4xf32, #tpu.memory_space<vmem>>, vector<32x4xf32>
    %cst_62 = arith.constant dense<0.000000e+00> : vector<4x4xf32>
    %285 = tpu.matmul %283, %284, %cst_62 {dimension_numbers = #tpu.dot_dimension_numbers<[1], [0], [0], [1], [0, 0, 1, 1], [], []>} : vector<4x32xf32>, vector<32x4xf32>, vector<4x4xf32> -> vector<4x4xf32>
    %c0_63 = arith.constant 0 : index
    %c0_64 = arith.constant 0 : index
    %286 = vector.load %arg13[%c0_63, %c0_64] : memref<1x4xf32, #tpu.memory_space<vmem>>, vector<1x4xf32>
    %287 = vector.broadcast %286 : vector<1x4xf32> to vector<4x4xf32>
    %288 = arith.addf %285, %287 : vector<4x4xf32>
    %c0_65 = arith.constant 0 : index
    %c0_66 = arith.constant 0 : index
    %289 = vector.load %arg14[%c0_65, %c0_66] : memref<4x4xf32, #tpu.memory_space<vmem>>, vector<4x4xf32>
    tpu.vector_store %arg14[%c0_65, %c0_66], %288 {strides = array<i32>} : memref<4x4xf32, #tpu.memory_space<vmem>>, vector<4x4xf32>,
    return
  }
}

</mosaic_0001>

<bundles_post_ra>
// kernel: tpu_custom_call.1
= control target key start
LH: loop header
LB: loop body
LE: loop exit
PB: predicated region body
PF: predicated region fallthrough
CT: control target
= control target key end

     0   :  { %v1846_v2 = vmov 0   ;;  %v1847_v13 = vmov 0.0   ;;  %s2303_s0 = inlined_call_operand.vmem [shape: s32[32,1], index: 0, kind: input, shape index: {}]   ;;  %s2304_s1 = inlined_call_operand.vmem [shape: f32[50,32], index: 1, kind: input, shape index: {}]   ;;  %s2305_s2 = inlined_call_operand.vmem [shape: f32[32,192], index: 2, kind: input, shape index: {}]   ;;  %s2306_s3 = inlined_call_operand.vmem [shape: f32[32,192], index: 3, kind: input, shape index: {}]   ;;  %s2307_s4 = inlined_call_operand.vmem [shape: f32[1,192], index: 4, kind: input, shape index: {}]   ;;  %s2308_s5 = inlined_call_operand.vmem [shape: f32[1,192], index: 5, kind: input, shape index: {}]   ;;  %s2309_s6 = inlined_call_operand.vmem [shape: f32[64,192], index: 6, kind: input, shape index: {}]   ;;  %s2310_s7 = inlined_call_operand.vmem [shape: f32[1,64], index: 7, kind: input, shape index: {}]   ;;  %s2311_s8 = inlined_call_operand.vmem [shape: f32[64,32], index: 8, kind: input, shape index: {}]   ;;  %s2312_s9 = inlined_call_operand.vmem [shape: f32[1,32], index: 9, kind: input, shape index: {}]   ;;  %s2313_s10 = inlined_call_operand.vmem [shape: f32[1,32], index: 10, kind: input, shape index: {}]   ;;  %s2314_s11 = inlined_call_operand.vmem [shape: f32[1,32], index: 11, kind: input, shape index: {}]   ;;  %s2315_s12 = inlined_call_operand.vmem [shape: f32[32,4], index: 12, kind: input, shape index: {}]   ;;  %s2316_s13 = inlined_call_operand.vmem [shape: f32[1,4], index: 13, kind: input, shape index: {}]   ;;  %s2317_s14 = inlined_call_operand.hbm [shape: f32[4,4], index: 14, kind: output, shape index: {}]  }
   0x1   :  { %v48_v0 = vld [vmem:[%s2303_s0] sm:$0xff]  ;;  %v50_v1 = vld [vmem:[%s2303_s0 + $0x10] sm:$0xff]  ;;  %1772 = vset.pattern.permute.xlu0 %v1846_v2  ;;  %1773 = vset.pattern.permute.xlu1 %v1846_v2  ;;  %v49_v3 = vld [vmem:[%s2303_s0 + $0x8] sm:$0xff] }
   0x2   :  { %v78_v4 = vld [vmem:[%s2304_s1] sm:$0xff]  ;;  %v79_v5 = vld [vmem:[%s2304_s1 + $0x8] sm:$0xff]  ;;  %55 = vperm.xlu0 %1772, %v48_v0   ;;  %61 = vperm.xlu1 %1773, %v50_v1   ;;  %v51_v6 = vld [vmem:[%s2303_s0 + $0x18] sm:$0xff] }
   0x3   :  { %v1592_v7 = vpack.c.bf16 %v79_v5, %v78_v4  ;;  %v80_v8 = vld [vmem:[%s2304_s1 + $0x10] sm:$0xff]  ;;  %v81_v9 = vld [vmem:[%s2304_s1 + $0x18] sm:$0xff]  ;;  %v82_v11 = vld [vmem:[%s2304_s1 + $0x20] sm:$0xff]  ;;  %284 = vmatprep.mubr.f32.mxu1 %v1847_v13 }
   0x4   :  { %v1596_v10 = vpack.c.bf16 %v81_v9, %v80_v8  ;;  %v83_v12 = vld [vmem:[%s2304_s1 + $0x28] sm:$0xff] }
   0x5   :  { %19 = vsyncpa [#allocation3], 0  ;;  %1593 = vmatprep.subr.bf16.mxu0 %v1592_v7  ;;  %v1600_v14 = vpack.c.bf16 %v83_v12, %v82_v11  ;;  %v84_v15 = vld [vmem:[%s2304_s1 + $0x30] sm:$0x3]  ;;  %vm98_vm0 = vcmask 1041408   ;;  %v310_v16 = vld [vmem:[%s2306_s3 + $0x8] sm:$0xff]  ;;  %v52_v31 = vlaneseq }
   0x6   :  { %1595 = vmatpush3.bf16.msra.mxu0 %v1592_v7  ;;  %58 = vperm.xlu0 %1772, %v49_v3   ;;  %v312_v17 = vld [vmem:[%s2306_s3 + $0x18] sm:$0xff]  ;;  %v188_v18 = vld [vmem:[%s2305_s2 + $0x8] sm:$0xff]  ;;  %v187_v22 = vld [vmem:[%s2305_s2] sm:$0xff]  ;;  %vm85_vm1 = vcmask 408576   ;;  %vm207_vm6 = vcmask 261120   ;;  %s1848_s1 = smov 64  }
   0x7   :  { %64 = vperm.xlu1 %1773, %v51_v6   ;;  %1597 = vmatprep.subr.bf16.mxu0 %v1596_v10  ;;  %v190_v19 = vld [vmem:[%s2305_s2 + $0x18] sm:$0xff]  ;;  %v1612_v20 = vpack.c.bf16 %v312_v17, %v310_v16  ;;  %v189_v23 = vld [vmem:[%s2305_s2 + $0x10] sm:$0xff]  ;;  %v192_v25 = vld [vmem:[%s2305_s2 + $0x28] sm:$0xff]  ;;  %v53_v32 = vand.u32 127, %v52_v31  ;;  %vm449_vm7 = vcmask 523264   ;;  %vm1850_vm8 = vmmov 0  }
   0x8   :  { %v1604_v21 = vpack.c.bf16 %v190_v19, %v188_v18  ;;  %v1606_v24 = vpack.c.bf16 %v189_v23, %v187_v22  ;;  %v194_v26 = vld [vmem:[%s2305_s2 + $0x38] sm:$0xff]  ;;  %v191_v28 = vld [vmem:[%s2305_s2 + $0x20] sm:$0xff]  ;;  %v193_v29 = vld [vmem:[%s2305_s2 + $0x30] sm:$0xff]  ;;  %vm1462_vm9 = vcmask 27648  }
   0x9   :  { %v1608_v27 = vpack.c.bf16 %v194_v26, %v192_v25  ;;  %v1610_v30 = vpack.c.bf16 %v193_v29, %v191_v28  ;;  %v309_v35 = vld [vmem:[%s2306_s3] sm:$0xff]  ;;  %v311_v36 = vld [vmem:[%s2306_s3 + $0x10] sm:$0xff]  ;;  %v314_v38 = vld [vmem:[%s2306_s3 + $0x28] sm:$0xff] }
   0xa   :  { %1599 = vmatpush3.bf16.msra.mxu0 %v1596_v10  ;;  %1605 = vmatprep.subr.bf16.mxu1 %v1604_v21  ;;  %v316_v39 = vld [vmem:[%s2306_s3 + $0x38] sm:$0xff]  ;;  %v1614_v42 = vpack.c.bf16 %v311_v36, %v309_v35  ;;  %v313_v45 = vld [vmem:[%s2306_s3 + $0x20] sm:$0xff]  ;;  %v315_v46 = vld [vmem:[%s2306_s3 + $0x30] sm:$0xff] }
   0xb   :  { %1601 = vmatprep.subr.bf16.mxu0 %v1600_v14  ;;  %1607 = vmatpush1.bf16.msra.mxu1 %v1606_v24  ;;  %v1616_v44 = vpack.c.bf16 %v316_v39, %v314_v38  ;;  %v1618_v49 = vpack.c.bf16 %v315_v46, %v313_v45  ;;  %v419_v50 = vld [vmem:[%s2309_s6 + $0x8] sm:$0xff]  ;;  %v421_v51 = vld [vmem:[%s2309_s6 + $0x18] sm:$0xff]  ;;  %v418_v53 = vld [vmem:[%s2309_s6] sm:$0xff] }
   0xc   :  { %1609 = vmatprep.subr.bf16.mxu1 %v1608_v27  ;;  %v2027_v52 = vpack.c.bf16 %v421_v51, %v419_v50  ;;  %v420_v54 = vld [vmem:[%s2309_s6 + $0x10] sm:$0xff]  ;;  %v423_v55 = vld [vmem:[%s2309_s6 + $0x28] sm:$0xff]  ;;  %v425_v56 = vld [vmem:[%s2309_s6 + $0x38] sm:$0xff] }
   0xd   :  { %v2043_v57 = vpack.c.bf16 %v420_v54, %v418_v53  ;;  %v2045_v59 = vpack.c.bf16 %v425_v56, %v423_v55  ;;  %v422_v60 = vld [vmem:[%s2309_s6 + $0x20] sm:$0xff]  ;;  %v424_v61 = vld [vmem:[%s2309_s6 + $0x30] sm:$0xff]  ;;  %v427_v63 = vld [vmem:[%s2309_s6 + $0x48] sm:$0xff] }
   0xe   :  { %1603 = vmatpush3.bf16.msra.mxu0 %v1600_v14  ;;  %v429_v0 = vld [vmem:[%s2309_s6 + $0x58] sm:$0xff]  ;;  %v2063_v1 = vpack.c.bf16 %v424_v61, %v422_v60  ;;  %v426_v4 = vld [vmem:[%s2309_s6 + $0x40] sm:$0xff]  ;;  %v428_v5 = vld [vmem:[%s2309_s6 + $0x50] sm:$0xff] }
   0xf   :  { %1554 = vmatprep.subr.msk.mxu0 %vm98_vm0, %v84_v15  ;;  %1611 = vmatpush1.bf16.msra.mxu1 %v1610_v30  ;;  %v2067_v3 = vpack.c.bf16 %v429_v0, %v427_v63  ;;  %v431_v7 = vld [vmem:[%s2309_s6 + $0x68] sm:$0xff]  ;;  %v433_v8 = vld [vmem:[%s2309_s6 + $0x78] sm:$0xff]  ;;  %v2086_v9 = vpack.c.bf16 %v428_v5, %v426_v4  ;;  %v430_v11 = vld [vmem:[%s2309_s6 + $0x60] sm:$0xff] }
  0x10   :  { %1621 = vmatprep.subr.bf16.mxu1 %v2027_v52  ;;  %v2090_v10 = vpack.c.bf16 %v433_v8, %v431_v7  ;;  %v432_v12 = vld [vmem:[%s2309_s6 + $0x70] sm:$0xff]  ;;  %v317_v17 = vld [vmem:[%s2308_s5] sm:$0x3] }
  0x11   :  { %v2103_v14 = vpack.c.bf16 %v432_v12, %v430_v11  ;;  %v195_v21 = vld [vmem:[%s2307_s4] sm:$0x3] }
  0x12   :  { %1555 = vmatpush3.msk.msra.mxu0 %vm98_vm0, %v84_v15  ;;  %v198_v15 = vshrl.u32 %v52_v31, 7 }
  0x13   :  { %1613 = vmatprep.subr.bf16.mxu0 %v1612_v20 }
  0x14   :  { %v199_v16 = vsub.s32 0, %v198_v15  ;;  %v203_v18 = vsub.s32 1, %v198_v15 }
  0x16   :  { %v322_v19 = vrot.slane %v317_v17, %v199_v16  ;;  %v326_v20 = vrot.slane %v317_v17, %v203_v18  ;;  %v200_v28 = vrot.slane %v195_v21, %v199_v16  ;;  %v204_v29 = vrot.slane %v195_v21, %v203_v18 }
  0x81   :  { %v56_v33 = vpop.permute.xlu0 %55  ;;  %v62_v34 = vpop.permute.xlu1 %61 }
  0x82   :  { %vm66_vm2 = vcmp.eq.s32.totalorder %v53_v32, %v56_v33  ;;  %vm68_vm3 = vcmp.eq.s32.totalorder %v53_v32, %v62_v34 }
  0x83   :  { %v1478_v37 = vsel %vm66_vm2, 1.0, %v1847_v13  ;;  %v1480_v43 = vsel %vm68_vm3, 1.0, %v1847_v13 }
  0x84   :  { %1556 = vmatprep.mubr.msk.f32.mxu0 %vm85_vm1, %v1478_v37 }
  0x85   :  { %v59_v40 = vpop.permute.xlu0 %58 }
  0x86   :  { %v65_v41 = vpop.permute.xlu1 %64  ;;  %vm67_vm4 = vcmp.eq.s32.totalorder %v53_v32, %v59_v40 }
  0x87   :  { %vm69_vm5 = vcmp.eq.s32.totalorder %v53_v32, %v65_v41  ;;  %v1479_v47 = vsel %vm67_vm4, 1.0, %v1847_v13 }
  0x88   :  { %1557 = vmatmul.mubr.msk.f32.vlgmr.msra.gmra.mrb[0].mxu0 %vm85_vm1, %v1479_v47  ;;  %v1481_v48 = vsel %vm69_vm5, 1.0, %v1847_v13 }
  0x89   :  { %1559 = vmatprep.mubr.msk.f32.mxu0 %vm85_vm1, %v1480_v43  ;;  %1615 = vmatpush1.bf16.msra.mxu0 %v1614_v42 }
  0x8a   :  { %1617 = vmatprep.subr.bf16.mxu0 %v1616_v44 }
  0x8c   :  { %1560 = vmatmul.mubr.msk.f32.gmra.mrb[2].mxu0 %vm85_vm1, %v1481_v48 }
  0x8d   :  { %1619 = vmatpush1.bf16.msra.mxu0 %v1618_v49  ;;  %393 = vmatprep.mubr.f32.mxu0 %v1847_v13 }
  0x8e   :  { %1637 = vmatprep.subr.bf16.mxu0 %v2027_v52 }
 0x15b   :  { %v1558_v58 = vpop.f32.mrb[0].mxu0 }
 0x15c   :  { %v168_v62 = vpop.f32.mrb[1].mxu0 }
 0x15d   :  { %1487 = vmatmul.mubr.msk.f32.vlgmr.msra.gmra.mrb[0].mxu1 %vm207_vm6, %v168_v62  ;;  %1491 = vmatmul.mubr.msk.f32.vlgmr.msra.gmra.mrb[4].mxu0 %vm207_vm6, %v168_v62 }
 0x15e   :  { %1623 = vmatpush1.bf16.msra.mxu1 %v2043_v57  ;;  %290 = vmatprep.mubr.f32.mxu1 %v1847_v13 }
 0x15f   :  { %v1561_v2 = vpop.f32.mrb[2].mxu0  ;;  %399 = vmatprep.mubr.f32.mxu0 %v1847_v13  ;;  %1625 = vmatprep.subr.bf16.mxu1 %v2045_v59 }
 0x160   :  { %v178_v6 = vpop.f32.mrb[3].mxu0  ;;  %1639 = vmatpush1.bf16.msra.mxu0 %v2043_v57 }
 0x161   :  { %1488 = vmatmul.mubr.msk.f32.gmra.mrb[2].mxu1 %vm207_vm6, %v1558_v58  ;;  %1492 = vmatmul.mubr.msk.f32.gmra.mrb[6].mxu0 %vm207_vm6, %v1558_v58 }
 0x162   :  { %1627 = vmatpush1.bf16.msra.mxu1 %v2063_v1  ;;  %296 = vmatprep.mubr.f32.mxu1 %v1847_v13 }
 0x163   :  { %405 = vmatprep.mubr.f32.mxu0 %v1847_v13  ;;  %1629 = vmatprep.subr.bf16.mxu1 %v2067_v3 }
 0x164   :  { %1641 = vmatprep.subr.bf16.mxu0 %v2045_v59 }
 0x165   :  { %1489 = vmatmul.mubr.msk.f32.gmra.mrb[4].mxu1 %vm207_vm6, %v178_v6  ;;  %1493 = vmatmul.mubr.msk.f32.gmra.mrb[8].mxu0 %vm207_vm6, %v178_v6 }
 0x166   :  { %1631 = vmatpush1.bf16.msra.mxu1 %v2086_v9  ;;  %302 = vmatprep.mubr.f32.mxu1 %v1847_v13 }
 0x167   :  { %411 = vmatprep.mubr.f32.mxu0 %v1847_v13  ;;  %1633 = vmatprep.subr.bf16.mxu1 %v2090_v10 }
 0x168   :  { %1643 = vmatpush1.bf16.msra.mxu0 %v2063_v1 }
 0x169   :  { %1490 = vmatmul.mubr.msk.f32.gmra.mrb[6].mxu1 %vm207_vm6, %v1561_v2  ;;  %1494 = vmatmul.mubr.msk.f32.gmra.mrb[10].mxu0 %vm207_vm6, %v1561_v2 }
 0x16a   :  { %1635 = vmatpush1.bf16.msra.mxu1 %v2103_v14  ;;  %517 = vmatprep.mubr.f32.mxu1 %v1847_v13 }
 0x16b   :  { %1645 = vmatprep.subr.bf16.mxu0 %v2067_v3  ;;  %612 = vmatprep.mubr.f32.mxu0 %v1847_v13 }
 0x16c   :  { %1647 = vmatpush1.bf16.msra.mxu0 %v2086_v9  ;;  %1653 = vmatprep.subr.bf16.mxu1 %v2027_v52 }
 0x16d   :  { %518 = vmatmul.mubr.f32.vlgmr.msra.gmra.mrb[8].mxu1 %v1847_v13  ;;  %1649 = vmatprep.subr.bf16.mxu0 %v2090_v10 }
 0x16e   :  { %1655 = vmatpush1.bf16.msra.mxu1 %v2043_v57  ;;  %724 = vmatprep.mubr.f32.mxu1 %v1847_v13 }
 0x16f   :  { %1657 = vmatprep.subr.bf16.mxu1 %v2045_v59 }
 0x170   :  { %1651 = vmatpush1.bf16.msra.mxu0 %v2103_v14 }
 0x171   :  { %1669 = vmatprep.subr.bf16.mxu0 %v2027_v52 }
 0x172   :  { %1659 = vmatpush1.bf16.msra.mxu1 %v2063_v1 }
 0x173   :  { %1661 = vmatprep.subr.bf16.mxu1 %v2067_v3 }
 0x176   :  { %1663 = vmatpush1.bf16.msra.mxu1 %v2086_v9 }
 0x177   :  { %1665 = vmatprep.subr.bf16.mxu1 %v2090_v10 }
 0x17a   :  { %1667 = vmatpush1.bf16.msra.mxu1 %v2103_v14 }
 0x17b   :  { %1685 = vmatprep.subr.bf16.mxu1 %v2027_v52 }
 0x230   :  { %v286_v22 = vpop.f32.mrb[0].mxu1  ;;  %v395_v23 = vpop.f32.mrb[4].mxu0 }
 0x231   :  { %v396_v24 = vadd.f32 %v395_v23, %v322_v19  ;;  %v288_v25 = vpop.f32.mrb[1].mxu1  ;;  %v397_v26 = vpop.f32.mrb[5].mxu0  ;;  %v287_v5 = vadd.f32 %v286_v22, %v200_v28 }
 0x232   :  { %v398_v27 = vadd.f32 %v397_v26, %v326_v20  ;;  %v289_v8 = vadd.f32 %v288_v25, %v204_v29 }
 0x233   :  { %v1064_v55 = vrot.slane %v396_v24, 4 }
 0x234   :  { %v292_v30 = vpop.f32.mrb[2].mxu1  ;;  %v401_v31 = vpop.f32.mrb[6].mxu0  ;;  %v1065_v63 = vrot.slane %v398_v27, 4 }
 0x235   :  { %v293_v32 = vadd.f32 %v292_v30, %v200_v28  ;;  %v402_v33 = vadd.f32 %v401_v31, %v322_v19  ;;  %v294_v34 = vpop.f32.mrb[3].mxu1  ;;  %v403_v35 = vpop.f32.mrb[7].mxu0 }
 0x236   :  { %v295_v36 = vadd.f32 %v294_v34, %v204_v29  ;;  %v404_v37 = vadd.f32 %v403_v35, %v326_v20 }
 0x237   :  { %v856_v40 = vrot.slane %v402_v33, 4 }
 0x238   :  { %v298_v38 = vpop.f32.mrb[4].mxu1  ;;  %v407_v39 = vpop.f32.mrb[8].mxu0  ;;  %v857_v45 = vrot.slane %v404_v37, 4 }
 0x239   :  { %v299_v41 = vadd.f32 %v298_v38, %v200_v28  ;;  %v408_v42 = vadd.f32 %v407_v39, %v322_v19  ;;  %v300_v43 = vpop.f32.mrb[5].mxu1  ;;  %v409_v44 = vpop.f32.mrb[9].mxu0 }
 0x23a   :  { %v301_v46 = vadd.f32 %v300_v43, %v204_v29  ;;  %v410_v47 = vadd.f32 %v409_v44, %v326_v20 }
 0x23b   :  { %v648_v48 = vrot.slane %v408_v42, 4  ;;  %v2136_v49 = vadd.f32 %v856_v40, %v299_v41 }
 0x23c   :  { %v2138_v50 = vadd.f32 %v857_v45, %v301_v46  ;;  %v649_v51 = vrot.slane %v410_v47, 4  ;;  %v304_v53 = vpop.f32.mrb[6].mxu1  ;;  %v413_v54 = vpop.f32.mrb[10].mxu0 }
 0x23d   :  { %v305_v56 = vadd.f32 %v304_v53, %v200_v28  ;;  %v414_v58 = vadd.f32 %v413_v54, %v322_v19  ;;  %v306_v60 = vpop.f32.mrb[7].mxu1  ;;  %v415_v61 = vpop.f32.mrb[11].mxu0  ;;  %v2140_v62 = vadd.f32 %v648_v48, %v293_v32 }
 0x23e   :  { %v2142_v0 = vadd.f32 %v649_v51, %v295_v36  ;;  %v307_v2 = vadd.f32 %v306_v60, %v204_v29  ;;  %v416_v4 = vadd.f32 %v415_v61, %v326_v20  ;;  %v2151_v20 = vld [vmem:[%s2310_s7] ss:$0 sm:$0xff] }
 0x23f   :  { %v443_v6 = vrot.slane %v414_v58, 4  ;;  %v2144_v7 = vadd.f32 %v1064_v55, %v305_v56 }
 0x240   :  { %v2146_v11 = vadd.f32 %v1065_v63, %v307_v2  ;;  %v444_v12 = vrot.slane %v416_v4, 4  ;;  %v519_v15 = vpop.f32.mrb[8].mxu1 }
 0x241   :  { %v447_v16 = vadd.f32 %v443_v6, %v287_v5  ;;  %v521_v17 = vpop.f32.mrb[9].mxu1 }
 0x242   :  { %v448_v18 = vadd.f32 %v444_v12, %v289_v8  ;;  %v531_v22 = vadd.f32 %v2151_v20, %v521_v17 }
 0x243   :  { %v524_v19 = vadd.f32 %v519_v15, %v447_v16 }
 0x245   :  { %v1496_v21 = vmul.f32 -1.442695, %v524_v19 }
 0x247   :  { %1774 = vpow2.f32 %v1496_v21 }
 0x251   :  { %v1775_v23 = vpop.eup %1774 }
 0x252   :  { %v528_v24 = vadd.f32 1.0, %v1775_v23 }
 0x254   :  { %1776 = vrcp.f32 %v528_v24 }
 0x25e   :  { %v1777_v25 = vpop.eup %1776 }
 0x25f   :  { %v532_v26 = vmul.f32 %v1777_v25, %v531_v22  ;;  %v535_v29 = vsub.f32 1.0, %v1777_v25  ;;  %v541_v31 = vmul.f32 0.0, %v1777_v25 }
 0x261   :  { %v533_v27 = vadd.f32 %v532_v26, %v448_v18 }
 0x263   :  { %1778 = vtanh.f32 %v533_v27 }
 0x26d   :  { %v1779_v28 = vpop.eup %1778 }
 0x26e   :  { %537 = vrot.lane.b32.xlu0 %v1779_v28, %s1848_s1 }
 0x2e0   :  { %v538_v30 = vpop.permute.xlu0 %537 }
 0x2e1   :  { %v540_v32 = vmul.f32 %v538_v30, %v535_v29 }
 0x2e3   :  { %v542_v33 = vadd.f32 %v541_v31, %v540_v32 }
 0x2e5   :  { %544 = vrot.lane.b32.xlu1 %v542_v33, %s1848_s1  ;;  %v642_v43 = vrot.slane %v542_v33, 4 }
 0x357   :  { %v545_v34 = vpop.permute.xlu1 %544 }
 0x358   :  { %1497 = vmatmul.mubr.msk.f32.vlgmr.msra.gmra.mrb[12].mxu0 %vm449_vm7, %v545_v34 }
 0x359   :  { %1671 = vmatpush1.bf16.msra.mxu0 %v2043_v57  ;;  %820 = vmatprep.mubr.f32.mxu0 %v1847_v13 }
 0x35a   :  { %1673 = vmatprep.subr.bf16.mxu0 %v2045_v59 }
 0x35d   :  { %1675 = vmatpush1.bf16.msra.mxu0 %v2063_v1 }
 0x35e   :  { %1677 = vmatprep.subr.bf16.mxu0 %v2067_v3 }
 0x361   :  { %1679 = vmatpush1.bf16.msra.mxu0 %v2086_v9 }
 0x362   :  { %1681 = vmatprep.subr.bf16.mxu0 %v2090_v10 }
 0x365   :  { %1683 = vmatpush1.bf16.msra.mxu0 %v2103_v14 }
 0x366   :  { %1701 = vmatprep.subr.bf16.mxu0 %v2027_v52 }
 0x42b   :  { %v614_v35 = vpop.f32.mrb[12].mxu0 }
 0x42c   :  { %v620_v36 = vrot.slane %v614_v35, 4  ;;  %v616_v37 = vpop.f32.mrb[13].mxu0 }
 0x42d   :  { %v629_v42 = vadd.f32 %v2151_v20, %v616_v37 }
 0x42e   :  { %v622_v38 = vadd.f32 %v620_v36, %v447_v16 }
 0x42f   :  { %v631_v44 = vrot.slane %v629_v42, 4 }
 0x430   :  { %v1498_v39 = vmul.f32 -1.442695, %v622_v38 }
 0x432   :  { %1780 = vpow2.f32 %v1498_v39 }
 0x43c   :  { %v1781_v40 = vpop.eup %1780 }
 0x43d   :  { %v626_v41 = vadd.f32 1.0, %v1781_v40 }
 0x43f   :  { %1782 = vrcp.f32 %v626_v41 }
 0x449   :  { %v1783_v45 = vpop.eup %1782 }
 0x44a   :  { %v633_v46 = vmul.f32 %v1783_v45, %v631_v44  ;;  %v644_v47 = vmul.f32 %v1783_v45, %v642_v43  ;;  %v636_v53 = vsub.f32 1.0, %v1783_v45 }
 0x44c   :  { %v634_v48 = vadd.f32 %v633_v46, %v448_v18 }
 0x44e   :  { %1784 = vtanh.f32 %v634_v48 }
 0x458   :  { %v1785_v51 = vpop.eup %1784 }
 0x459   :  { %638 = vrot.lane.b32.xlu0 %v1785_v51, %s1848_s1 }
 0x4cb   :  { %v639_v54 = vpop.permute.xlu0 %638 }
 0x4cc   :  { %v641_v55 = vmul.f32 %v639_v54, %v636_v53 }
 0x4ce   :  { %v645_v56 = vadd.f32 %v644_v47, %v641_v55 }
 0x4d0   :  { %v655_v58 = vrot.slane %v645_v56, 4 }
 0x4d2   :  { %656 = vrot.lane.b32.xlu1 %v655_v58, %s1848_s1 }
 0x544   :  { %v657_v60 = vpop.permute.xlu1 %656 }
 0x545   :  { %1499 = vmatmul.mubr.msk.f32.vlgmr.msra.gmra.mrb[10].mxu1 %vm449_vm7, %v657_v60 }
 0x546   :  { %1687 = vmatpush1.bf16.msra.mxu1 %v2043_v57  ;;  %932 = vmatprep.mubr.f32.mxu1 %v1847_v13 }
 0x547   :  { %1689 = vmatprep.subr.bf16.mxu1 %v2045_v59 }
 0x54a   :  { %1691 = vmatpush1.bf16.msra.mxu1 %v2063_v1 }
 0x54b   :  { %1693 = vmatprep.subr.bf16.mxu1 %v2067_v3 }
 0x54e   :  { %1695 = vmatpush1.bf16.msra.mxu1 %v2086_v9 }
 0x54f   :  { %1697 = vmatprep.subr.bf16.mxu1 %v2090_v10 }
 0x552   :  { %1699 = vmatpush1.bf16.msra.mxu1 %v2103_v14 }
 0x553   :  { %1717 = vmatprep.subr.bf16.mxu1 %v2027_v52 }
 0x618   :  { %v726_v61 = vpop.f32.mrb[10].mxu1 }
 0x619   :  { %v731_v63 = vadd.f32 %v726_v61, %v2140_v62  ;;  %v728_v2 = vpop.f32.mrb[11].mxu1 }
 0x61a   :  { %v738_v8 = vadd.f32 %v2151_v20, %v728_v2 }
 0x61b   :  { %v1500_v4 = vmul.f32 -1.442695, %v731_v63 }
 0x61d   :  { %1786 = vpow2.f32 %v1500_v4 }
 0x627   :  { %v1787_v5 = vpop.eup %1786 }
 0x628   :  { %v735_v6 = vadd.f32 1.0, %v1787_v5 }
 0x62a   :  { %1788 = vrcp.f32 %v735_v6 }
 0x634   :  { %v1789_v12 = vpop.eup %1788 }
 0x635   :  { %v739_v15 = vmul.f32 %v1789_v12, %v738_v8  ;;  %v742_v18 = vsub.f32 1.0, %v1789_v12  ;;  %v749_v21 = vmul.f32 %v1789_v12, %v655_v58 }
 0x637   :  { %v740_v16 = vadd.f32 %v739_v15, %v2142_v0 }
 0x639   :  { %1790 = vtanh.f32 %v740_v16 }
 0x643   :  { %v1791_v17 = vpop.eup %1790 }
 0x644   :  { %744 = vrot.lane.b32.xlu0 %v1791_v17, %s1848_s1 }
 0x6b6   :  { %v745_v19 = vpop.permute.xlu0 %744 }
 0x6b7   :  { %v747_v23 = vmul.f32 %v745_v19, %v742_v18 }
 0x6b9   :  { %v750_v24 = vadd.f32 %v749_v21, %v747_v23 }
 0x6bb   :  { %752 = vrot.lane.b32.xlu1 %v750_v24, %s1848_s1  ;;  %v850_v33 = vrot.slane %v750_v24, 4 }
 0x72d   :  { %v753_v22 = vpop.permute.xlu1 %752 }
 0x72e   :  { %1501 = vmatmul.mubr.msk.f32.vlgmr.msra.gmra.mrb[14].mxu0 %vm449_vm7, %v753_v22 }
 0x72f   :  { %1703 = vmatpush1.bf16.msra.mxu0 %v2043_v57  ;;  %1028 = vmatprep.mubr.f32.mxu0 %v1847_v13 }
 0x730   :  { %1705 = vmatprep.subr.bf16.mxu0 %v2045_v59 }
 0x733   :  { %1707 = vmatpush1.bf16.msra.mxu0 %v2063_v1 }
 0x734   :  { %1709 = vmatprep.subr.bf16.mxu0 %v2067_v3 }
 0x737   :  { %1711 = vmatpush1.bf16.msra.mxu0 %v2086_v9 }
 0x738   :  { %1713 = vmatprep.subr.bf16.mxu0 %v2090_v10 }
 0x73b   :  { %1715 = vmatpush1.bf16.msra.mxu0 %v2103_v14 }
 0x73c   :  { %1733 = vmatprep.subr.bf16.mxu0 %v2027_v52 }
 0x801   :  { %v822_v25 = vpop.f32.mrb[14].mxu0 }
 0x802   :  { %v828_v26 = vrot.slane %v822_v25, 4  ;;  %v824_v27 = vpop.f32.mrb[15].mxu0 }
 0x803   :  { %v837_v32 = vadd.f32 %v2151_v20, %v824_v27 }
 0x804   :  { %v830_v28 = vadd.f32 %v828_v26, %v2140_v62 }
 0x805   :  { %v839_v34 = vrot.slane %v837_v32, 4 }
 0x806   :  { %v1502_v29 = vmul.f32 -1.442695, %v830_v28 }
 0x808   :  { %1792 = vpow2.f32 %v1502_v29 }
 0x812   :  { %v1793_v30 = vpop.eup %1792 }
 0x813   :  { %v834_v31 = vadd.f32 1.0, %v1793_v30 }
 0x815   :  { %1794 = vrcp.f32 %v834_v31 }
 0x81f   :  { %v1795_v35 = vpop.eup %1794 }
 0x820   :  { %v841_v36 = vmul.f32 %v1795_v35, %v839_v34  ;;  %v852_v37 = vmul.f32 %v1795_v35, %v850_v33  ;;  %v844_v39 = vsub.f32 1.0, %v1795_v35 }
 0x822   :  { %v842_v38 = vadd.f32 %v841_v36, %v2142_v0 }
 0x824   :  { %1796 = vtanh.f32 %v842_v38 }
 0x82e   :  { %v1797_v52 = vpop.eup %1796 }
 0x82f   :  { %846 = vrot.lane.b32.xlu0 %v1797_v52, %s1848_s1 }
 0x8a1   :  { %v847_v62 = vpop.permute.xlu0 %846 }
 0x8a2   :  { %v849_v40 = vmul.f32 %v847_v62, %v844_v39 }
 0x8a4   :  { %v853_v41 = vadd.f32 %v852_v37, %v849_v40 }
 0x8a6   :  { %v863_v42 = vrot.slane %v853_v41, 4 }
 0x8a8   :  { %864 = vrot.lane.b32.xlu1 %v863_v42, %s1848_s1 }
 0x91a   :  { %v865_v43 = vpop.permute.xlu1 %864 }
 0x91b   :  { %1503 = vmatmul.mubr.msk.f32.vlgmr.msra.gmra.mrb[12].mxu1 %vm449_vm7, %v865_v43 }
 0x91c   :  { %1719 = vmatpush1.bf16.msra.mxu1 %v2043_v57  ;;  %1140 = vmatprep.mubr.f32.mxu1 %v1847_v13 }
 0x91d   :  { %1721 = vmatprep.subr.bf16.mxu1 %v2045_v59 }
 0x920   :  { %1723 = vmatpush1.bf16.msra.mxu1 %v2063_v1 }
 0x921   :  { %1725 = vmatprep.subr.bf16.mxu1 %v2067_v3 }
 0x924   :  { %1727 = vmatpush1.bf16.msra.mxu1 %v2086_v9 }
 0x925   :  { %1729 = vmatprep.subr.bf16.mxu1 %v2090_v10 }
 0x928   :  { %1731 = vmatpush1.bf16.msra.mxu1 %v2103_v14 }
 0x9ee   :  { %v934_v0 = vpop.f32.mrb[12].mxu1 }
 0x9ef   :  { %v939_v44 = vadd.f32 %v934_v0, %v2136_v49  ;;  %v936_v45 = vpop.f32.mrb[13].mxu1 }
 0x9f0   :  { %v946_v51 = vadd.f32 %v2151_v20, %v936_v45 }
 0x9f1   :  { %v1504_v46 = vmul.f32 -1.442695, %v939_v44 }
 0x9f3   :  { %1798 = vpow2.f32 %v1504_v46 }
 0x9fd   :  { %v1799_v47 = vpop.eup %1798 }
 0x9fe   :  { %v943_v48 = vadd.f32 1.0, %v1799_v47 }
 0xa00   :  { %1800 = vrcp.f32 %v943_v48 }
 0xa0a   :  { %v1801_v53 = vpop.eup %1800 }
 0xa0b   :  { %v947_v54 = vmul.f32 %v1801_v53, %v946_v51  ;;  %v950_v58 = vsub.f32 1.0, %v1801_v53  ;;  %v957_v61 = vmul.f32 %v1801_v53, %v863_v42 }
 0xa0d   :  { %v948_v55 = vadd.f32 %v947_v54, %v2138_v50 }
 0xa0f   :  { %1802 = vtanh.f32 %v948_v55  ;;  %v1270_v55 = vld [vmem:[%s2311_s8] sm:$0xff] }
 0xa19   :  { %v1803_v56 = vpop.eup %1802 }
 0xa1a   :  { %952 = vrot.lane.b32.xlu0 %v1803_v56, %s1848_s1  ;;  %v1849_v56 = vmov 0.0|0.0  }
 0xa1b   :  { %1748 = vmatprep.subr.bf16.mxu1 %v1849_v56 }
 0xa8c   :  { %v953_v60 = vpop.permute.xlu0 %952 }
 0xa8d   :  { %v955_v63 = vmul.f32 %v953_v60, %v950_v58 }
 0xa8f   :  { %v958_v2 = vadd.f32 %v957_v61, %v955_v63  ;;  %v1274_v61 = vld [vmem:[%s2311_s8 + $0x20] sm:$0xff]  ;;  %v1275_v63 = vld [vmem:[%s2311_s8 + $0x28] sm:$0xff] }
 0xa91   :  { %960 = vrot.lane.b32.xlu1 %v958_v2, %s1848_s1 }
 0xb03   :  { %v961_v4 = vpop.permute.xlu1 %960 }
 0xb04   :  { %1505 = vmatmul.mubr.msk.f32.vlgmr.msra.gmra.mrb[16].mxu0 %vm449_vm7, %v961_v4  ;;  %v1755_v4 = vpack.c.bf16 %v1275_v63, %v1274_v61 }
 0xb05   :  { %1735 = vmatpush1.bf16.msra.mxu0 %v2043_v57  ;;  %1236 = vmatprep.mubr.f32.mxu0 %v1847_v13 }
 0xb06   :  { %1737 = vmatprep.subr.bf16.mxu0 %v2045_v59 }
 0xb09   :  { %1739 = vmatpush1.bf16.msra.mxu0 %v2063_v1  ;;  %v1058_v1 = vrot.slane %v958_v2, 4 }
 0xb0a   :  { %1741 = vmatprep.subr.bf16.mxu0 %v2067_v3 }
 0xb0d   :  { %1743 = vmatpush1.bf16.msra.mxu0 %v2086_v9 }
 0xb0e   :  { %1745 = vmatprep.subr.bf16.mxu0 %v2090_v10 }
 0xb11   :  { %1747 = vmatpush1.bf16.msra.mxu0 %v2103_v14 }
 0xb12   :  { %1760 = vmatprep.subr.bf16.mxu0 %v1849_v56 }
 0xbd7   :  { %v1030_v5 = vpop.f32.mrb[16].mxu0 }
 0xbd8   :  { %v1036_v6 = vrot.slane %v1030_v5, 4  ;;  %v1032_v8 = vpop.f32.mrb[17].mxu0  ;;  %v1277_v5 = vld [vmem:[%s2311_s8 + $0x38] sm:$0xff] }
 0xbd9   :  { %v1045_v59 = vadd.f32 %v2151_v20, %v1032_v8 }
 0xbda   :  { %v1038_v12 = vadd.f32 %v1036_v6, %v2136_v49 }
 0xbdb   :  { %v1047_v3 = vrot.slane %v1045_v59, 4 }
 0xbdc   :  { %v1506_v57 = vmul.f32 -1.442695, %v1038_v12 }
 0xbde   :  { %1804 = vpow2.f32 %v1506_v57 }
 0xbe8   :  { %v1805_v15 = vpop.eup %1804 }
 0xbe9   :  { %v1042_v16 = vadd.f32 1.0, %v1805_v15 }
 0xbeb   :  { %1806 = vrcp.f32 %v1042_v16 }
 0xbf5   :  { %v1807_v17 = vpop.eup %1806 }
 0xbf6   :  { %v1049_v9 = vmul.f32 %v1807_v17, %v1047_v3  ;;  %v1060_v18 = vmul.f32 %v1807_v17, %v1058_v1  ;;  %v1052_v19 = vsub.f32 1.0, %v1807_v17  ;;  %v1378_v1 = vld [vmem:[%s2315_s12] sm:$0xff]  ;;  %v1379_v3 = vld [vmem:[%s2315_s12 + $0x8] sm:$0xff] }
 0xbf7   :  { %v1761_v17 = vpack.c.bf16 %v1379_v3, %v1378_v1 }
 0xbf8   :  { %v1050_v10 = vadd.f32 %v1049_v9, %v2138_v50  ;;  %v1380_v9 = vld [vmem:[%s2315_s12 + $0x10] sm:$0xff] }
 0xbfa   :  { %1808 = vtanh.f32 %v1050_v10 }
 0xc04   :  { %v1809_v14 = vpop.eup %1808 }
 0xc05   :  { %1054 = vrot.lane.b32.xlu0 %v1809_v14, %s1848_s1  ;;  %v1511_v14 = vld [vmem:[%s2312_s9] ss:$0 sm:$0xff]  ;;  %s1851_s9 = smov [#allocation2]  }
 0xc06   :  { %s1470_s15 = sshll.u32 %s1851_s9, 4  ;;  %s1471_s15 = int_to_ptr.vmem [resolvable:$true] %s1470_s15 }
 0xc07   :  { %p1827_p1 = scmp.lt.s32.totalorder %s1471_s15, %s1471_s15 }
 0xc77   :  { %v1055_v49 = vpop.permute.xlu0 %1054 }
 0xc78   :  { %v1057_v21 = vmul.f32 %v1055_v49, %v1052_v19  ;;  %v1513_v49 = vld [vmem:[%s2313_s10] ss:$0 sm:$0xff]  ;;  %s1822_s10 = scalar_lea.vmem %s1471_s15, 64 }
 0xc79   :  { %p1823_p0 = scmp.ne.s32.totalorder %s1471_s15, %s1822_s10  ;;  %p1828_p2 = scmp.lt.s32.totalorder %s1822_s10, %s1822_s10 }
 0xc7a   :  { %v1061_v23 = vadd.f32 %v1060_v18, %v1057_v21  ;;  %v1381_v18 = vld [vmem:[%s2315_s12 + $0x18] sm:$0xff] }
 0xc7b   :  { %v1764_v10 = vpack.c.bf16 %v1381_v18, %v1380_v9  ;;  %p1829_p3 = por %p1828_p2, %p1827_p1 }
 0xc7c   :  { %v1071_v24 = vrot.slane %v1061_v23, 4 }
 0xc7d   :  { %p1830_p4 = pnand %p1829_p3, %p1823_p0 }
 0xc7e   :  { %1072 = vrot.lane.b32.xlu1 %v1071_v24, %s1848_s1 }
 0xcf0   :  { %v1073_v22 = vpop.permute.xlu1 %1072 }
 0xcf1   :  { %1507 = vmatmul.mubr.msk.f32.vlgmr.msra.gmra.mrb[14].mxu1 %vm449_vm7, %v1073_v22 }
 0xcf2   :  { %1578 = vmatprep.mubr.msk.f32.mxu1 %vm1850_vm8, %v1847_v13 }
 0xdc4   :  { %v1142_v25 = vpop.f32.mrb[14].mxu1 }
 0xdc5   :  { %v1147_v26 = vadd.f32 %v1142_v25, %v2144_v7  ;;  %v1144_v27 = vpop.f32.mrb[15].mxu1 }
 0xdc6   :  { %v1154_v30 = vadd.f32 %v2151_v20, %v1144_v27  ;;  %v1515_v27 = vld [vmem:[%s2316_s13] ss:$0 sm:$0xff] }
 0xdc7   :  { %v1508_v28 = vmul.f32 -1.442695, %v1147_v26 }
 0xdc9   :  { %1810 = vpow2.f32 %v1508_v28 }
 0xdd3   :  { %v1811_v50 = vpop.eup %1810 }
 0xdd4   :  { %v1151_v29 = vadd.f32 1.0, %v1811_v50 }
 0xdd6   :  { %1812 = vrcp.f32 %v1151_v29 }
 0xde0   :  { %v1813_v31 = vpop.eup %1812 }
 0xde1   :  { %v1155_v32 = vmul.f32 %v1813_v31, %v1154_v30  ;;  %v1158_v35 = vsub.f32 1.0, %v1813_v31  ;;  %v1165_v37 = vmul.f32 %v1813_v31, %v1071_v24  ;;  %v1514_v24 = vld [vmem:[%s2314_s11] ss:$0 sm:$0xff] }
 0xde3   :  { %v1156_v33 = vadd.f32 %v1155_v32, %v2146_v11 }
 0xde5   :  { %1814 = vtanh.f32 %v1156_v33 }
 0xdef   :  { %v1815_v34 = vpop.eup %1814 }
 0xdf0   :  { %1160 = vrot.lane.b32.xlu0 %v1815_v34, %s1848_s1 }
 0xe62   :  { %v1161_v36 = vpop.permute.xlu0 %1160 }
 0xe63   :  { %v1163_v38 = vmul.f32 %v1161_v36, %v1158_v35 }
 0xe65   :  { %v1166_v52 = vadd.f32 %v1165_v37, %v1163_v38 }
 0xe67   :  { %1168 = vrot.lane.b32.xlu1 %v1166_v52, %s1848_s1  ;;  %v1266_v46 = vrot.slane %v1166_v52, 4 }
 0xed9   :  { %v1169_v39 = vpop.permute.xlu1 %1168 }
 0xeda   :  { %1509 = vmatmul.mubr.msk.f32.vlgmr.msra.gmra.mrb[18].mxu0 %vm449_vm7, %v1169_v39 }
 0xedb   :  { %1589 = vmatprep.mubr.msk.f32.mxu0 %vm1850_vm8, %v1847_v13  ;;  %v1276_v13 = vld [vmem:[%s2311_s8 + $0x30] sm:$0xff]  ;;  %1762 = vmatpush3.bf16.msra.mxu0 %v1761_v17 }
 0xedc   :  { %v1758_v6 = vpack.c.bf16 %v1277_v5, %v1276_v13  ;;  %1763 = vmatprep.subr.bf16.mxu0 %v1849_v56 }
 0xedf   :  { %1765 = vmatpush3.bf16.msra.mxu0 %v1764_v10 }
 0xfad   :  { %v1238_v62 = vpop.f32.mrb[18].mxu0 }
 0xfae   :  { %v1244_v40 = vrot.slane %v1238_v62, 4  ;;  %v1240_v41 = vpop.f32.mrb[19].mxu0 }
 0xfaf   :  { %v1253_v45 = vadd.f32 %v2151_v20, %v1240_v41  ;;  %v1272_v20 = vld [vmem:[%s2311_s8 + $0x10] sm:$0xff] }
 0xfb0   :  { %v1246_v42 = vadd.f32 %v1244_v40, %v2144_v7  ;;  %v1271_v7 = vld [vmem:[%s2311_s8 + $0x8] sm:$0xff] }
 0xfb1   :  { %v1255_v47 = vrot.slane %v1253_v45, 4  ;;  %v1749_v58 = vpack.c.bf16 %v1271_v7, %v1270_v55 }
 0xfb2   :  { %v1510_v43 = vmul.f32 -1.442695, %v1246_v42 }
 0xfb3   :  { %1750 = vmatpush3.bf16.msra.mxu1 %v1749_v58 }
 0xfb4   :  { %1816 = vpow2.f32 %v1510_v43  ;;  %1751 = vmatprep.subr.bf16.mxu1 %v1849_v56 }
 0xfbe   :  { %v1817_v0 = vpop.eup %1816 }
 0xfbf   :  { %v1250_v44 = vadd.f32 1.0, %v1817_v0 }
 0xfc1   :  { %1818 = vrcp.f32 %v1250_v44 }
 0xfcb   :  { %v1819_v48 = vpop.eup %1818 }
 0xfcc   :  { %v1257_v51 = vmul.f32 %v1819_v48, %v1255_v47  ;;  %v1268_v53 = vmul.f32 %v1819_v48, %v1266_v46  ;;  %v1260_v8 = vsub.f32 1.0, %v1819_v48 }
 0xfce   :  { %v1258_v54 = vadd.f32 %v1257_v51, %v2146_v11  ;;  %v1273_v11 = vld [vmem:[%s2311_s8 + $0x18] sm:$0xff] }
 0xfcf   :  { %v1752_v60 = vpack.c.bf16 %v1273_v11, %v1272_v20 }
 0xfd0   :  { %1820 = vtanh.f32 %v1258_v54 }
 0xfd1   :  { %1753 = vmatpush3.bf16.msra.mxu1 %v1752_v60 }
 0xfd2   :  { %1754 = vmatprep.subr.bf16.mxu1 %v1849_v56 }
 0xfd5   :  { %1756 = vmatpush3.bf16.msra.mxu1 %v1755_v4 }
 0xfd6   :  { %1757 = vmatprep.subr.bf16.mxu1 %v1849_v56 }
 0xfd9   :  { %1759 = vmatpush3.bf16.msra.mxu1 %v1758_v6 }
 0xfda   :  { %v1821_v2 = vpop.eup %1820 }
 0xfdb   :  { %1262 = vrot.lane.b32.xlu0 %v1821_v2, %s1848_s1 }
0x104d   :  { %v1263_v12 = vpop.permute.xlu0 %1262 }
0x104e   :  { %v1265_v57 = vmul.f32 %v1263_v12, %v1260_v8 }
0x1050   :  { %v1269_v15 = vadd.f32 %v1268_v53, %v1265_v57 }
0x1052   :  { %v1286_v16 = vrot.slane %v1269_v15, 4 }
0x1054   :  { %1287 = vrot.lane.b32.xlu1 %v1286_v16, %s1848_s1 }
0x10c6   :  { %v1288_v59 = vpop.permute.xlu1 %1287 }
0x10c7   :  { %1579 = vmatmul.mubr.msk.f32.vlgmr.msra.gmra.mrb[16].mxu1 %vm449_vm7, %v1288_v59 }
0x119a   :  { %v1357_v19 = vpop.f32.mrb[16].mxu1 }
0x119b   :  { %v1358_v21 = vadd.f32 %v1511_v14, %v1357_v19  ;;  %v1580_v23 = vpop.f32.mrb[17].mxu1 }
0x119d   :  { %v1368_v22 = vmul.f32 %v1513_v49, %v1358_v21 }
0x119f   :  { %v1376_v25 = vadd.f32 %v1514_v24, %v1368_v22 }
0x11a1   :  { %v1377_v26 = vmax.f32 %v1376_v25, 0.0 }
0x11a3   :  { %1590 = vmatmul.mubr.msk.f32.vlgmr.msra.gmra.mrb[20].mxu0 %vm207_vm6, %v1377_v26 }
0x1276   :  { %v1458_v28 = vpop.f32.mrb[20].mxu0 }
0x1277   :  { %v1459_v50 = vadd.f32 %v1515_v27, %v1458_v28  ;;  %v1591_v29 = vpop.f32.mrb[21].mxu0 }
0x1279   :  { %1463 = vst.msk [vmem:[#allocation2] sm:$0xf] %vm1462_vm9, %v1459_v50 }
0x127a   :  { %1833 = shalt.err (!%p1830_p4)
}
0x127b   :  { %s1834_s16 = scalar_lea.hbm %s2317_s14, 64 }
0x127c   :  { %p1835_p5 = scmp.ne.s32.totalorder %s2317_s14, %s1834_s16  ;;  %p1838_p6 = scmp.lt.u32.totalorder %s1834_s16, %s2317_s14 }
0x127e   :  { %p1840_p7 = pnand %p1838_p6, %p1835_p5 }
0x1280   :  { %1843 = shalt.err (!%p1840_p7)
}
0x1281   :  { %1473 = dma.vmem_to_hbm [thread:$0]  %s1471_s15, 64, %s2317_s14, [#allocation3]  }
0x1282   :  { %1844 = dma.done.wait [#allocation3], 64  }
0x1283   :  { %1845 = vsyncadd [#allocation3], 4294967232 }
0x1284   :  { %1477 = vsyncpa [#allocation3], 1 }

</bundles_post_ra>
